<compile_context>
chip_gen: v5e
topology: v5e:2x2
jax: 0.10.0
libtpu: 0.0.40
codegen_flags: <defaults>
</compile_context>

<pallas_src>
import math
import numpy as np
import jax
import jax.numpy as jnp
from jax.experimental import pallas as pl
from jax.experimental.pallas import tpu as pltpu


def _round_up(x, m):
    return (x + m - 1) // m * m


def _choose_tm(n_rows):
    """Row-tile size: single step for small windows, >=2 steps (megacore) and
    <=2048 rows/step for large ones."""
    if n_rows <= 1024:
        return _round_up(n_rows, 8)
    return min(2048, _round_up(-(-n_rows // 2), 8))


# -----------------------------------------------------------------------------
# Fused kernel: per row tile
#   tproj = emb_table_pad @ W + b          (K_pad, h*d_k)   -- tiny MXU matmul
#   out   = one_hot_tile @ tproj           (tm, h*d_k)      -- MXU gather
# Both operands/results are lane-dense (last dim = h*d_k, multiple of 128 in
# practice); the contraction dim K_pad is padded to a multiple of 128.
# -----------------------------------------------------------------------------
def polar_rpe_kernel(oh_ref, table_ref, w_ref, b_ref, out_ref):
    tproj = (
        jnp.dot(table_ref[...], w_ref[...], preferred_element_type=jnp.float32)
        + b_ref[...]
    )
    out_ref[...] = jnp.dot(
        oh_ref[...], tproj, preferred_element_type=jnp.float32
    ).astype(out_ref.dtype)


# -----------------------------------------------------------------------------
# Host-side precompute (constructor-time, like the PyTorch buffer): padded
# one-hot over the constant relative_pos, and the zero-padded embedding table.
# -----------------------------------------------------------------------------
def build_one_hot(relative_pos_np, num_entries, tm):
    n_rows = int(relative_pos_np.shape[0])
    n_pad = _round_up(n_rows, tm)
    k_pad = _round_up(num_entries, 128)
    oh = np.zeros((n_pad, k_pad), dtype=np.float32)
    oh[np.arange(n_rows), relative_pos_np.astype(np.int64)] = 1.0
    return jnp.asarray(oh), n_pad, k_pad


def polar_rpe_core(one_hot, emb_table_pad, proj_w, proj_b, *, h, d_k, num_seq, tm):
    """Returns the (h, num_seq, num_seq, d_k) core tensor (pre-batch-expand)."""
    n_pad, k_pad = one_hot.shape
    d_r = emb_table_pad.shape[1]
    hd = h * d_k
    n_rows = num_seq * num_seq

    grid_spec = pltpu.PrefetchScalarGridSpec(
        num_scalar_prefetch=0,
        grid=(n_pad // tm,),
        in_specs=[
            pl.BlockSpec((tm, k_pad), lambda i: (i, 0)),      # one-hot row tile
            pl.BlockSpec((k_pad, d_r), lambda i: (0, 0)),     # padded emb table (invariant)
            pl.BlockSpec((d_r, hd), lambda i: (0, 0)),        # projection weight (invariant)
            pl.BlockSpec((1, hd), lambda i: (0, 0)),          # projection bias (invariant)
        ],
        out_specs=pl.BlockSpec((tm, hd), lambda i: (i, 0)),   # lane-dense output
    )

    flat = pl.pallas_call(
        polar_rpe_kernel,
        out_shape=jax.ShapeDtypeStruct((n_pad, hd), jnp.float32),
        grid_spec=grid_spec,
        compiler_params=pltpu.CompilerParams(
            dimension_semantics=("parallel",)),
    )(one_hot, emb_table_pad, proj_w, proj_b.reshape(1, hd))

    flat = flat[:n_rows]
    # Wrapper glue mirroring the PyTorch views (kernel output stays lane-dense).
    return flat.reshape(num_seq, num_seq, h, d_k).transpose(2, 0, 1, 3)


def polar_rpe_forward(bs, one_hot, emb_table_pad, proj_w, proj_b, *, h, d_k,
                      num_seq, tm):
    core = polar_rpe_core(one_hot, emb_table_pad, proj_w, proj_b,
                          h=h, d_k=d_k, num_seq=num_seq, tm=tm)
    # Mirrors torch `.unsqueeze(0).expand(bs, ...)` (a view).  Consumers that
    # can take the (h, S, S, d_k) core directly should do so and broadcast
    # lazily inside their own jit to avoid materializing bs copies in HBM.
    return jnp.broadcast_to(core[None], (bs, h, num_seq, num_seq, d_k))


# -----------------------------------------------------------------------------
# __init__-time precompute of the relative position index table (pure numpy,
# identical math to the PyTorch constructor).
# -----------------------------------------------------------------------------
def build_relative_pos(k, window_size):
    wh, ww = window_size
    num_direction = 4 * k
    num_distance = math.floor(math.sqrt(wh * wh + ww * ww))

    coords = np.stack(
        np.meshgrid(np.arange(wh), np.arange(ww), indexing="ij"), axis=-1)
    coords_flatten = coords.reshape(-1, 2)
    relative_coords = (coords_flatten[:, None, :] -
                       coords_flatten[None, :, :]).reshape(-1, 2).astype(np.float32)

    norm_rel = np.linalg.norm(relative_coords, axis=-1)
    relative_distance_pos = norm_rel.astype(np.int32)            # trunc like .int()

    ang = np.arange(num_direction - 1) * math.pi / 2 / k
    unit_direction = np.stack([np.cos(ang), np.sin(ang)])        # (2, 4k-1)
    relative_direction = relative_coords @ unit_direction
    relative_direction_pos = np.argmax(relative_direction, axis=-1).astype(np.int32)

    relative_pos = relative_direction_pos * num_distance + relative_distance_pos
    return relative_pos.astype(np.int32), num_direction, num_distance


# -----------------------------------------------------------------------------
# Deterministic parameter init (mirrors nn.init in PolarRPE.init_weights).
# -----------------------------------------------------------------------------
def init_params(key, num_entries, d_r, h, d_k):
    k_emb, k_w = jax.random.split(key)
    emb_table = jax.random.uniform(k_emb, (num_entries, d_r),
                                   minval=0.0, maxval=0.2, dtype=jnp.float32)
    fan_in, fan_out = d_r, h * d_k
    bound = math.sqrt(6.0 / (fan_in + fan_out))
    proj_w = jax.random.uniform(k_w, (d_r, h * d_k),
                                minval=-bound, maxval=bound, dtype=jnp.float32)
    proj_b = jnp.zeros((h * d_k,), jnp.float32)
    return emb_table, proj_w, proj_b


# -----------------------------------------------------------------------------
# Pure-JAX reference for correctness checking.
# -----------------------------------------------------------------------------
def polar_rpe_ref(relative_pos, emb_table, proj_w, proj_b, bs, h, d_k, num_seq):
    emb = emb_table[relative_pos]                                 # (S*S, d_r)
    proj = emb @ proj_w + proj_b                                  # (S*S, h*d_k)
    out = proj.reshape(num_seq, num_seq, h, d_k).transpose(2, 0, 1, 3)
    return jnp.broadcast_to(out[None], (bs, h, num_seq, num_seq, d_k))


if __name__ == "__main__":
    # Small config consistent with the module (k=3, reduced h/d_k/d_r/window).
    k = 3
    h = 4
    d_k = 32
    d_r = 64
    window_size = (4, 4)
    bs = 2

    wh, ww = window_size
    num_seq = wh * ww                                             # 16 -> 256 pairs
    relative_pos_np, num_direction, num_distance = build_relative_pos(k, window_size)
    num_entries = num_direction * num_distance                    # 60 embedding rows
    n_rows = num_seq * num_seq

    emb_table, proj_w, proj_b = init_params(
        jax.random.PRNGKey(0), num_entries, d_r, h, d_k)

    # Constructor-time constants: row tile, padded one-hot, padded table.
    tm = _choose_tm(n_rows)                                       # 256 -> single grid step
    one_hot, n_pad, k_pad = build_one_hot(relative_pos_np, num_entries, tm)
    emb_table_pad = jnp.pad(emb_table, ((0, k_pad - num_entries), (0, 0)))

    out = polar_rpe_forward(bs, one_hot, emb_table_pad, proj_w, proj_b,
                            h=h, d_k=d_k, num_seq=num_seq, tm=tm)
    out = jax.block_until_ready(out)

    ref = polar_rpe_ref(jnp.asarray(relative_pos_np), emb_table, proj_w, proj_b,
                        bs, h, d_k, num_seq)
    assert out.shape == (bs, h, num_seq, num_seq, d_k)
    np.testing.assert_allclose(np.asarray(out), np.asarray(ref),
                               rtol=1e-5, atol=1e-5)
    print("KERNEL_OK")
</pallas_src>

<mosaic_0001>
module attributes {stable_mosaic.version = 11 : i64} {
  func.func @polar_rpe_kernel(%arg0: i32, %arg1: memref<256x128xf32, #tpu.memory_space<vmem>>, %arg2: memref<128x64xf32, #tpu.memory_space<vmem>>, %arg3: memref<64x128xf32, #tpu.memory_space<vmem>>, %arg4: memref<1x128xf32, #tpu.memory_space<vmem>>, %arg5: memref<256x128xf32, #tpu.memory_space<vmem>>) attributes {dimension_semantics = [#tpu.dimension_semantics<parallel>], iteration_bounds = array<i64: 1>, scalar_prefetch = 0 : i64, scratch_operands = 0 : i64, tpu.core_type = #tpu.core_type<tc>, window_params = [{transform_indices = @transform_0, window_bounds = array<i64: 256, 128>}, {pipeline_mode = #tpu.pipeline_mode<synchronous>, transform_indices = @transform_1, window_bounds = array<i64: 128, 64>}, {pipeline_mode = #tpu.pipeline_mode<synchronous>, transform_indices = @transform_2, window_bounds = array<i64: 64, 128>}, {pipeline_mode = #tpu.pipeline_mode<synchronous>, transform_indices = @transform_3, window_bounds = array<i64: 1, 128>}, {transform_indices = @transform_4, window_bounds = array<i64: 256, 128>}]} {
    %c0 = arith.constant 0 : index
    %c0_0 = arith.constant 0 : index
    %0 = vector.load %arg2[%c0, %c0_0] : memref<128x64xf32, #tpu.memory_space<vmem>>, vector<128x64xf32>
    %c0_1 = arith.constant 0 : index
    %c0_2 = arith.constant 0 : index
    %1 = vector.load %arg3[%c0_1, %c0_2] : memref<64x128xf32, #tpu.memory_space<vmem>>, vector<64x128xf32>
    %cst = arith.constant dense<0.000000e+00> : vector<128x128xf32>
    %2 = tpu.matmul %0, %1, %cst {dimension_numbers = #tpu.dot_dimension_numbers<[1], [0], [0], [1], [0, 0, 1, 1], [], []>} : vector<128x64xf32>, vector<64x128xf32>, vector<128x128xf32> -> vector<128x128xf32>
    %c0_3 = arith.constant 0 : index
    %c0_4 = arith.constant 0 : index
    %3 = vector.load %arg4[%c0_3, %c0_4] : memref<1x128xf32, #tpu.memory_space<vmem>>, vector<1x128xf32>
    %4 = vector.broadcast %3 : vector<1x128xf32> to vector<128x128xf32>
    %5 = arith.addf %2, %4 : vector<128x128xf32>
    %c0_5 = arith.constant 0 : index
    %c0_6 = arith.constant 0 : index
    %6 = vector.load %arg1[%c0_5, %c0_6] : memref<256x128xf32, #tpu.memory_space<vmem>>, vector<256x128xf32>
    %cst_7 = arith.constant dense<0.000000e+00> : vector<256x128xf32>
    %7 = tpu.matmul %6, %5, %cst_7 {dimension_numbers = #tpu.dot_dimension_numbers<[1], [0], [0], [1], [0, 0, 1, 1], [], []>} : vector<256x128xf32>, vector<128x128xf32>, vector<256x128xf32> -> vector<256x128xf32>
    %c0_8 = arith.constant 0 : index
    %c0_9 = arith.constant 0 : index
    %8 = vector.load %arg5[%c0_8, %c0_9] : memref<256x128xf32, #tpu.memory_space<vmem>>, vector<256x128xf32>
    tpu.vector_store %arg5[%c0_8, %c0_9], %7 {strides = array<i32>} : memref<256x128xf32, #tpu.memory_space<vmem>>, vector<256x128xf32>,
    return
  }
  func.func @transform_0(%arg0: i32) -> (i32, i32) {
    %c0_i32 = arith.constant 0 : i32
    %c0_i32_0 = arith.constant 0 : i32
    return %arg0, %c0_i32 : i32, i32
  }
  func.func @transform_1(%arg0: i32) -> (i32, i32) {
    %c0_i32 = arith.constant 0 : i32
    %c0_i32_0 = arith.constant 0 : i32
    %c0_i32_1 = arith.constant 0 : i32
    return %c0_i32, %c0_i32_0 : i32, i32
  }
  func.func @transform_2(%arg0: i32) -> (i32, i32) {
    %c0_i32 = arith.constant 0 : i32
    %c0_i32_0 = arith.constant 0 : i32
    %c0_i32_1 = arith.constant 0 : i32
    return %c0_i32, %c0_i32_0 : i32, i32
  }
  func.func @transform_3(%arg0: i32) -> (i32, i32) {
    %c0_i32 = arith.constant 0 : i32
    %c0_i32_0 = arith.constant 0 : i32
    %c0_i32_1 = arith.constant 0 : i32
    return %c0_i32, %c0_i32_0 : i32, i32
  }
  func.func @transform_4(%arg0: i32) -> (i32, i32) {
    %c0_i32 = arith.constant 0 : i32
    %c0_i32_0 = arith.constant 0 : i32
    return %arg0, %c0_i32 : i32, i32
  }
}

</mosaic_0001>

<bundles_post_ra>
// kernel: tpu_custom_call.1
= control target key start
LH: loop header
LB: loop body
LE: loop exit
PB: predicated region body
PF: predicated region fallthrough
CT: control target
= control target key end

     0   :  { %9 = vsyncpa [#allocation3], 0  ;;  %s618_s0 = inlined_call_operand.hbm [shape: f32[256,128], index: 0, kind: input, shape index: {}]   ;;  %s619_s1 = inlined_call_operand.vmem [shape: f32[128,64], index: 1, kind: input, shape index: {}]   ;;  %s620_s2 = inlined_call_operand.vmem [shape: f32[64,128], index: 2, kind: input, shape index: {}]   ;;  %s621_s3 = inlined_call_operand.vmem [shape: f32[1,128], index: 3, kind: input, shape index: {}]   ;;  %s622_s4 = inlined_call_operand.hbm [shape: f32[256,128], index: 4, kind: output, shape index: {}]  }
   0x1   :  { %10 = vsyncpa [#allocation4], 0  ;;  %s15_s17 = sshll.u32 %s618_s0, 4  ;;  %s477_s18 = smov [#allocation2]   ;;  %s16_s17 = int_to_ptr.hbm [resolvable:$true] %s15_s17 }
   0x2   :  { %s17_s19 = sshll.u32 %s477_s18, 4  ;;  %s478_s20 = smov 128   ;;  %s18_s19 = int_to_ptr.vmem [resolvable:$true] %s17_s19 }
   0x3   :  { %s479_s21 = smov 8  }
   0x4   :  { %23 = dma.hbm_to_vmem [thread:$0]  %s16_s17, 4096, %s18_s19, [#allocation3], %s478_s20, %s478_s20, %s479_s21  }
   0x5   :  { %473 = dma.done.wait [#allocation3], 4096  }
   0x6   :  { %474 = vsyncadd [#allocation3], 4294963200  ;;  %v57_v0 = vld [vmem:[%s620_s2 + $0x38] sm:$0xff]  ;;  %v56_v1 = vld [vmem:[%s620_s2 + $0x30] sm:$0xff]  ;;  %vm62_vm0 = vcmask 523264   ;;  %s359_s22 = sshll.u32 %s622_s4, 4  ;;  %s360_s22 = int_to_ptr.hbm [resolvable:$true] %s359_s22 }
   0x7   :  { %119 = vmatpush.msra.mxu0 %v57_v0  ;;  %v55_v2 = vld [vmem:[%s620_s2 + $0x28] sm:$0xff]  ;;  %v54_v3 = vld [vmem:[%s620_s2 + $0x20] sm:$0xff]  ;;  %v53_v4 = vld [vmem:[%s620_s2 + $0x18] sm:$0xff] }
   0x8   :  { %v52_v5 = vld [vmem:[%s620_s2 + $0x10] sm:$0xff]  ;;  %v51_v6 = vld [vmem:[%s620_s2 + $0x8] sm:$0xff]  ;;  %v50_v7 = vld [vmem:[%s620_s2] sm:$0xff] }
   0x9   :  { %120 = vmatpush.msra.mxu0 %v56_v1  ;;  %v34_v8 = vld [vmem:[%s619_s1] sm:$0xff]  ;;  %v35_v9 = vld [vmem:[%s619_s1 + $0x8] sm:$0xff]  ;;  %v36_v10 = vld [vmem:[%s619_s1 + $0x10] sm:$0xff] }
   0xa   :  { %v37_v11 = vld [vmem:[%s619_s1 + $0x18] sm:$0xff]  ;;  %v38_v12 = vld [vmem:[%s619_s1 + $0x20] sm:$0xff]  ;;  %v39_v13 = vld [vmem:[%s619_s1 + $0x28] sm:$0xff] }
   0xb   :  { %121 = vmatpush.msra.mxu0 %v55_v2  ;;  %v40_v14 = vld [vmem:[%s619_s1 + $0x30] sm:$0xff]  ;;  %v41_v15 = vld [vmem:[%s619_s1 + $0x38] sm:$0xff]  ;;  %v42_v16 = vld [vmem:[%s619_s1 + $0x40] sm:$0xff] }
   0xc   :  { %v43_v17 = vld [vmem:[%s619_s1 + $0x48] sm:$0xff]  ;;  %v44_v18 = vld [vmem:[%s619_s1 + $0x50] sm:$0xff]  ;;  %v45_v19 = vld [vmem:[%s619_s1 + $0x58] sm:$0xff] }
   0xd   :  { %122 = vmatpush.msra.mxu0 %v54_v3  ;;  %v46_v20 = vld [vmem:[%s619_s1 + $0x60] sm:$0xff]  ;;  %v47_v21 = vld [vmem:[%s619_s1 + $0x68] sm:$0xff]  ;;  %v48_v22 = vld [vmem:[%s619_s1 + $0x70] sm:$0xff] }
   0xe   :  { %v49_v23 = vld [vmem:[%s619_s1 + $0x78] sm:$0xff]  ;;  %v424_v39 = vld [vmem:[%s621_s3] ss:$0 sm:$0xff]  ;;  %v177_v61 = vld [vmem:[#allocation2 + $0x8] sm:$0xff]  ;;  %s480_s3 = smov [#allocation5]  }
   0xf   :  { %123 = vmatpush.msra.mxu0 %v53_v4  ;;  %v187_v57 = vld [vmem:[#allocation2 + $0x58] sm:$0xff]  ;;  %v176_v58 = vld [vmem:[#allocation2] sm:$0xff]  ;;  %v189_v63 = vld [vmem:[#allocation2 + $0x68] sm:$0xff]  ;;  %s357_s17 = sshll.u32 %s480_s3, 4  ;;  %s358_s17 = int_to_ptr.vmem [resolvable:$true] %s357_s17 }
  0x10   :  { %v199_v59 = vld [vmem:[#allocation2 + $0xb8] sm:$0xff]  ;;  %v188_v60 = vld [vmem:[#allocation2 + $0x60] sm:$0xff]  ;;  %v178_v0 = vld [vmem:[#allocation2 + $0x10] sm:$0xff] }
  0x11   :  { %124 = vmatpush.msra.mxu0 %v52_v5  ;;  %v200_v62 = vld [vmem:[#allocation2 + $0xc0] sm:$0xff]  ;;  %v201_v1 = vld [vmem:[#allocation2 + $0xc8] sm:$0xff]  ;;  %v190_v2 = vld [vmem:[#allocation2 + $0x70] sm:$0xff] }
  0x12   :  { %v179_v3 = vld [vmem:[#allocation2 + $0x18] sm:$0xff]  ;;  %v202_v4 = vld [vmem:[#allocation2 + $0xd0] sm:$0xff] }
  0x13   :  { %125 = vmatpush.msra.mxu0 %v51_v6  ;;  %v191_v5 = vld [vmem:[#allocation2 + $0x78] sm:$0xff]  ;;  %v180_v6 = vld [vmem:[#allocation2 + $0x20] sm:$0xff] }
  0x15   :  { %126 = vmatpush.msra.mxu0 %v50_v7  ;;  %v203_v7 = vld [vmem:[#allocation2 + $0xd8] sm:$0xff] }
  0x16   :  { %372 = vmatmul.msk.f32.vlgmr.msra.gmra.mxu0 %vm62_vm0, %v34_v8  ;;  %v192_v8 = vld [vmem:[#allocation2 + $0x80] sm:$0xff] }
  0x1e   :  { %373 = vmatmul.msk.f32.gmra.mxu0 %vm62_vm0, %v35_v9  ;;  %v181_v9 = vld [vmem:[#allocation2 + $0x28] sm:$0xff] }
  0x26   :  { %374 = vmatmul.msk.f32.gmra.mxu0 %vm62_vm0, %v36_v10  ;;  %v204_v10 = vld [vmem:[#allocation2 + $0xe0] sm:$0xff] }
  0x2e   :  { %375 = vmatmul.msk.f32.gmra.mxu0 %vm62_vm0, %v37_v11  ;;  %v193_v11 = vld [vmem:[#allocation2 + $0x88] sm:$0xff] }
  0x36   :  { %376 = vmatmul.msk.f32.gmra.mxu0 %vm62_vm0, %v38_v12  ;;  %v182_v12 = vld [vmem:[#allocation2 + $0x30] sm:$0xff] }
  0x3e   :  { %377 = vmatmul.msk.f32.gmra.mxu0 %vm62_vm0, %v39_v13  ;;  %v205_v13 = vld [vmem:[#allocation2 + $0xe8] sm:$0xff] }
  0x46   :  { %378 = vmatmul.msk.f32.gmra.mxu0 %vm62_vm0, %v40_v14  ;;  %v194_v14 = vld [vmem:[#allocation2 + $0x90] sm:$0xff] }
  0x4e   :  { %379 = vmatmul.msk.f32.gmra.mxu0 %vm62_vm0, %v41_v15  ;;  %v183_v15 = vld [vmem:[#allocation2 + $0x38] sm:$0xff] }
  0x56   :  { %380 = vmatmul.msk.f32.gmra.mxu0 %vm62_vm0, %v42_v16  ;;  %v206_v16 = vld [vmem:[#allocation2 + $0xf0] sm:$0xff] }
  0x5e   :  { %381 = vmatmul.msk.f32.gmra.mxu0 %vm62_vm0, %v43_v17  ;;  %v195_v17 = vld [vmem:[#allocation2 + $0x98] sm:$0xff] }
  0x66   :  { %382 = vmatmul.msk.f32.gmra.mxu0 %vm62_vm0, %v44_v18  ;;  %v184_v18 = vld [vmem:[#allocation2 + $0x40] sm:$0xff] }
  0x6e   :  { %383 = vmatmul.msk.f32.gmra.mxu0 %vm62_vm0, %v45_v19  ;;  %v207_v19 = vld [vmem:[#allocation2 + $0xf8] sm:$0xff] }
  0x76   :  { %384 = vmatmul.msk.f32.gmra.mxu0 %vm62_vm0, %v46_v20  ;;  %v196_v20 = vld [vmem:[#allocation2 + $0xa0] sm:$0xff] }
  0x7e   :  { %385 = vmatmul.msk.f32.gmra.mxu0 %vm62_vm0, %v47_v21  ;;  %v185_v21 = vld [vmem:[#allocation2 + $0x48] sm:$0xff] }
  0x86   :  { %386 = vmatmul.msk.f32.gmra.mxu0 %vm62_vm0, %v48_v22  ;;  %v197_v22 = vld [vmem:[#allocation2 + $0xa8] sm:$0xff] }
  0x8e   :  { %387 = vmatmul.msk.f32.gmra.mxu0 %vm62_vm0, %v49_v23  ;;  %v186_v23 = vld [vmem:[#allocation2 + $0x50] sm:$0xff] }
  0x93   :  { %v600_v24 = vpop.f32.mrf.mxu0 }
  0x94   :  { %v129_v56 = vadd.f32 %v424_v39, %v600_v24  ;;  %v198_v24 = vld [vmem:[#allocation2 + $0xb0] sm:$0xff] }
  0x9b   :  { %v602_v25 = vpop.f32.mrf.mxu0 }
  0x9c   :  { %v132_v55 = vadd.f32 %v424_v39, %v602_v25 }
  0xa3   :  { %v604_v26 = vpop.f32.mrf.mxu0 }
  0xa4   :  { %v135_v54 = vadd.f32 %v424_v39, %v604_v26 }
  0xab   :  { %v137_v27 = vpop.f32.mrf.mxu0 }
  0xac   :  { %v138_v53 = vadd.f32 %v424_v39, %v137_v27 }
  0xb3   :  { %v140_v28 = vpop.f32.mrf.mxu0 }
  0xb4   :  { %v141_v52 = vadd.f32 %v424_v39, %v140_v28 }
  0xbb   :  { %v143_v29 = vpop.f32.mrf.mxu0 }
  0xbc   :  { %v144_v51 = vadd.f32 %v424_v39, %v143_v29 }
  0xc3   :  { %v146_v30 = vpop.f32.mrf.mxu0 }
  0xc4   :  { %v147_v50 = vadd.f32 %v424_v39, %v146_v30 }
  0xcb   :  { %v149_v31 = vpop.f32.mrf.mxu0 }
  0xcc   :  { %v150_v49 = vadd.f32 %v424_v39, %v149_v31 }
  0xd3   :  { %v152_v32 = vpop.f32.mrf.mxu0 }
  0xd4   :  { %v153_v48 = vadd.f32 %v424_v39, %v152_v32 }
  0xdb   :  { %v155_v33 = vpop.f32.mrf.mxu0 }
  0xdc   :  { %v156_v47 = vadd.f32 %v424_v39, %v155_v33 }
  0xe3   :  { %v158_v34 = vpop.f32.mrf.mxu0 }
  0xe4   :  { %v159_v46 = vadd.f32 %v424_v39, %v158_v34 }
  0xeb   :  { %v161_v35 = vpop.f32.mrf.mxu0 }
  0xec   :  { %v162_v45 = vadd.f32 %v424_v39, %v161_v35 }
  0xf3   :  { %v164_v36 = vpop.f32.mrf.mxu0 }
  0xf4   :  { %v165_v44 = vadd.f32 %v424_v39, %v164_v36 }
  0xfb   :  { %v167_v37 = vpop.f32.mrf.mxu0 }
  0xfc   :  { %v168_v43 = vadd.f32 %v424_v39, %v167_v37 }
 0x103   :  { %v170_v38 = vpop.f32.mrf.mxu0 }
 0x104   :  { %v171_v42 = vadd.f32 %v424_v39, %v170_v38 }
 0x10b   :  { %v173_v40 = vpop.f32.mrf.mxu0 }
 0x10c   :  { %v174_v41 = vadd.f32 %v424_v39, %v173_v40 }
 0x10e   :  { %208 = vmatpush.msra.mxu1 %v174_v41  ;;  %388 = vmatpush.msra.mxu2 %v174_v41 }
 0x10f   :  { %389 = vmatpush.msra.mxu3 %v174_v41 }
 0x110   :  { %209 = vmatpush.msra.mxu1 %v171_v42  ;;  %390 = vmatpush.msra.mxu2 %v171_v42 }
 0x111   :  { %391 = vmatpush.msra.mxu3 %v171_v42 }
 0x112   :  { %210 = vmatpush.msra.mxu1 %v168_v43  ;;  %392 = vmatpush.msra.mxu2 %v168_v43 }
 0x113   :  { %393 = vmatpush.msra.mxu3 %v168_v43 }
 0x114   :  { %211 = vmatpush.msra.mxu1 %v165_v44  ;;  %394 = vmatpush.msra.mxu2 %v165_v44 }
 0x115   :  { %395 = vmatpush.msra.mxu3 %v165_v44 }
 0x116   :  { %212 = vmatpush.msra.mxu1 %v162_v45  ;;  %396 = vmatpush.msra.mxu2 %v162_v45 }
 0x117   :  { %397 = vmatpush.msra.mxu3 %v162_v45 }
 0x118   :  { %213 = vmatpush.msra.mxu1 %v159_v46  ;;  %398 = vmatpush.msra.mxu2 %v159_v46 }
 0x119   :  { %399 = vmatpush.msra.mxu3 %v159_v46 }
 0x11a   :  { %214 = vmatpush.msra.mxu1 %v156_v47  ;;  %400 = vmatpush.msra.mxu2 %v156_v47 }
 0x11b   :  { %401 = vmatpush.msra.mxu3 %v156_v47 }
 0x11c   :  { %215 = vmatpush.msra.mxu1 %v153_v48  ;;  %402 = vmatpush.msra.mxu2 %v153_v48 }
 0x11d   :  { %403 = vmatpush.msra.mxu3 %v153_v48 }
 0x11e   :  { %216 = vmatpush.msra.mxu1 %v150_v49  ;;  %404 = vmatpush.msra.mxu2 %v150_v49 }
 0x11f   :  { %405 = vmatpush.msra.mxu3 %v150_v49 }
 0x120   :  { %217 = vmatpush.msra.mxu1 %v147_v50  ;;  %406 = vmatpush.msra.mxu2 %v147_v50 }
 0x121   :  { %407 = vmatpush.msra.mxu3 %v147_v50 }
 0x122   :  { %218 = vmatpush.msra.mxu1 %v144_v51  ;;  %408 = vmatpush.msra.mxu2 %v144_v51 }
 0x123   :  { %409 = vmatpush.msra.mxu3 %v144_v51 }
 0x124   :  { %219 = vmatpush.msra.mxu1 %v141_v52  ;;  %410 = vmatpush.msra.mxu2 %v141_v52 }
 0x125   :  { %411 = vmatpush.msra.mxu3 %v141_v52 }
 0x126   :  { %220 = vmatpush.msra.mxu1 %v138_v53  ;;  %412 = vmatpush.msra.mxu2 %v138_v53 }
 0x127   :  { %413 = vmatpush.msra.mxu3 %v138_v53 }
 0x128   :  { %221 = vmatpush.msra.mxu1 %v135_v54  ;;  %414 = vmatpush.msra.mxu2 %v135_v54 }
 0x129   :  { %415 = vmatpush.msra.mxu3 %v135_v54 }
 0x12a   :  { %222 = vmatpush.msra.mxu1 %v132_v55  ;;  %416 = vmatpush.msra.mxu2 %v132_v55 }
 0x12b   :  { %417 = vmatpush.msra.mxu3 %v132_v55 }
 0x12c   :  { %223 = vmatpush.msra.mxu1 %v129_v56  ;;  %418 = vmatpush.msra.mxu2 %v129_v56 }
 0x12d   :  { %419 = vmatpush.msra.mxu3 %v129_v56  ;;  %257 = vmatmul.f32.vlgmr.msra.gmra.mxu2 %v187_v57 }
 0x12e   :  { %224 = vmatmul.f32.vlgmr.msra.gmra.mxu1 %v176_v58  ;;  %293 = vmatmul.f32.vlgmr.msra.gmra.mxu3 %v199_v59 }
 0x135   :  { %260 = vmatmul.f32.gmra.mxu2 %v188_v60 }
 0x136   :  { %227 = vmatmul.f32.gmra.mxu1 %v177_v61  ;;  %296 = vmatmul.f32.gmra.mxu3 %v200_v62 }
 0x13d   :  { %263 = vmatmul.f32.gmra.mxu2 %v189_v63 }
 0x13e   :  { %230 = vmatmul.f32.gmra.mxu1 %v178_v0  ;;  %299 = vmatmul.f32.gmra.mxu3 %v201_v1 }
 0x145   :  { %266 = vmatmul.f32.gmra.mxu2 %v190_v2 }
 0x146   :  { %233 = vmatmul.f32.gmra.mxu1 %v179_v3  ;;  %302 = vmatmul.f32.gmra.mxu3 %v202_v4 }
 0x14d   :  { %269 = vmatmul.f32.gmra.mxu2 %v191_v5 }
 0x14e   :  { %236 = vmatmul.f32.gmra.mxu1 %v180_v6  ;;  %305 = vmatmul.f32.gmra.mxu3 %v203_v7 }
 0x155   :  { %272 = vmatmul.f32.gmra.mxu2 %v192_v8 }
 0x156   :  { %239 = vmatmul.f32.gmra.mxu1 %v181_v9  ;;  %308 = vmatmul.f32.gmra.mxu3 %v204_v10 }
 0x15d   :  { %275 = vmatmul.f32.gmra.mxu2 %v193_v11 }
 0x15e   :  { %242 = vmatmul.f32.gmra.mxu1 %v182_v12  ;;  %311 = vmatmul.f32.gmra.mxu3 %v205_v13 }
 0x165   :  { %278 = vmatmul.f32.gmra.mxu2 %v194_v14 }
 0x166   :  { %245 = vmatmul.f32.gmra.mxu1 %v183_v15  ;;  %314 = vmatmul.f32.gmra.mxu3 %v206_v16 }
 0x16d   :  { %281 = vmatmul.f32.gmra.mxu2 %v195_v17 }
 0x16e   :  { %248 = vmatmul.f32.gmra.mxu1 %v184_v18  ;;  %317 = vmatmul.f32.gmra.mxu3 %v207_v19 }
 0x175   :  { %284 = vmatmul.f32.gmra.mxu2 %v196_v20 }
 0x176   :  { %251 = vmatmul.f32.gmra.mxu1 %v185_v21 }
 0x17d   :  { %287 = vmatmul.f32.gmra.mxu2 %v197_v22 }
 0x17e   :  { %254 = vmatmul.f32.gmra.mxu1 %v186_v23 }
 0x185   :  { %290 = vmatmul.f32.gmra.mxu2 %v198_v24 }
 0x1ab   :  { %v225_v25 = vpop.f32.mrf.mxu1 }
 0x1ac   :  { %321 = vst [vmem:[#allocation5] sm:$0xff] %v225_v25 }
 0x1b0   :  { %v258_v26 = vpop.f32.mrf.mxu2 }
 0x1b1   :  { %332 = vst [vmem:[#allocation5 + $0x58] sm:$0xff] %v258_v26  ;;  %v294_v27 = vpop.f32.mrf.mxu3 }
 0x1b2   :  { %344 = vst [vmem:[#allocation5 + $0xb8] sm:$0xff] %v294_v27 }
 0x1b3   :  { %v228_v28 = vpop.f32.mrf.mxu1 }
 0x1b4   :  { %322 = vst [vmem:[#allocation5 + $0x8] sm:$0xff] %v228_v28 }
 0x1b8   :  { %v261_v29 = vpop.f32.mrf.mxu2 }
 0x1b9   :  { %333 = vst [vmem:[#allocation5 + $0x60] sm:$0xff] %v261_v29  ;;  %v297_v30 = vpop.f32.mrf.mxu3 }
 0x1ba   :  { %345 = vst [vmem:[#allocation5 + $0xc0] sm:$0xff] %v297_v30 }
 0x1bb   :  { %v231_v31 = vpop.f32.mrf.mxu1 }
 0x1bc   :  { %323 = vst [vmem:[#allocation5 + $0x10] sm:$0xff] %v231_v31 }
 0x1c0   :  { %v264_v32 = vpop.f32.mrf.mxu2 }
 0x1c1   :  { %334 = vst [vmem:[#allocation5 + $0x68] sm:$0xff] %v264_v32  ;;  %v300_v33 = vpop.f32.mrf.mxu3 }
 0x1c2   :  { %346 = vst [vmem:[#allocation5 + $0xc8] sm:$0xff] %v300_v33 }
 0x1c3   :  { %v234_v34 = vpop.f32.mrf.mxu1 }
 0x1c4   :  { %324 = vst [vmem:[#allocation5 + $0x18] sm:$0xff] %v234_v34 }
 0x1c8   :  { %v267_v35 = vpop.f32.mrf.mxu2 }
 0x1c9   :  { %335 = vst [vmem:[#allocation5 + $0x70] sm:$0xff] %v267_v35  ;;  %v303_v36 = vpop.f32.mrf.mxu3 }
 0x1ca   :  { %347 = vst [vmem:[#allocation5 + $0xd0] sm:$0xff] %v303_v36 }
 0x1cb   :  { %v237_v37 = vpop.f32.mrf.mxu1 }
 0x1cc   :  { %325 = vst [vmem:[#allocation5 + $0x20] sm:$0xff] %v237_v37 }
 0x1d0   :  { %v270_v38 = vpop.f32.mrf.mxu2 }
 0x1d1   :  { %336 = vst [vmem:[#allocation5 + $0x78] sm:$0xff] %v270_v38  ;;  %v306_v39 = vpop.f32.mrf.mxu3 }
 0x1d2   :  { %348 = vst [vmem:[#allocation5 + $0xd8] sm:$0xff] %v306_v39 }
 0x1d3   :  { %v240_v40 = vpop.f32.mrf.mxu1 }
 0x1d4   :  { %326 = vst [vmem:[#allocation5 + $0x28] sm:$0xff] %v240_v40 }
 0x1d8   :  { %v273_v41 = vpop.f32.mrf.mxu2 }
 0x1d9   :  { %337 = vst [vmem:[#allocation5 + $0x80] sm:$0xff] %v273_v41  ;;  %v309_v42 = vpop.f32.mrf.mxu3 }
 0x1da   :  { %349 = vst [vmem:[#allocation5 + $0xe0] sm:$0xff] %v309_v42 }
 0x1db   :  { %v243_v43 = vpop.f32.mrf.mxu1 }
 0x1dc   :  { %327 = vst [vmem:[#allocation5 + $0x30] sm:$0xff] %v243_v43 }
 0x1e0   :  { %v276_v44 = vpop.f32.mrf.mxu2 }
 0x1e1   :  { %338 = vst [vmem:[#allocation5 + $0x88] sm:$0xff] %v276_v44  ;;  %v312_v45 = vpop.f32.mrf.mxu3 }
 0x1e2   :  { %350 = vst [vmem:[#allocation5 + $0xe8] sm:$0xff] %v312_v45 }
 0x1e3   :  { %v246_v46 = vpop.f32.mrf.mxu1 }
 0x1e4   :  { %328 = vst [vmem:[#allocation5 + $0x38] sm:$0xff] %v246_v46 }
 0x1e8   :  { %v279_v47 = vpop.f32.mrf.mxu2 }
 0x1e9   :  { %339 = vst [vmem:[#allocation5 + $0x90] sm:$0xff] %v279_v47  ;;  %v315_v48 = vpop.f32.mrf.mxu3 }
 0x1ea   :  { %351 = vst [vmem:[#allocation5 + $0xf0] sm:$0xff] %v315_v48 }
 0x1eb   :  { %v249_v49 = vpop.f32.mrf.mxu1 }
 0x1ec   :  { %329 = vst [vmem:[#allocation5 + $0x40] sm:$0xff] %v249_v49 }
 0x1f0   :  { %v282_v50 = vpop.f32.mrf.mxu2 }
 0x1f1   :  { %340 = vst [vmem:[#allocation5 + $0x98] sm:$0xff] %v282_v50  ;;  %v318_v51 = vpop.f32.mrf.mxu3 }
 0x1f2   :  { %352 = vst [vmem:[#allocation5 + $0xf8] sm:$0xff] %v318_v51 }
 0x1f3   :  { %v252_v52 = vpop.f32.mrf.mxu1 }
 0x1f4   :  { %330 = vst [vmem:[#allocation5 + $0x48] sm:$0xff] %v252_v52 }
 0x1f8   :  { %v285_v53 = vpop.f32.mrf.mxu2 }
 0x1f9   :  { %341 = vst [vmem:[#allocation5 + $0xa0] sm:$0xff] %v285_v53 }
 0x1fb   :  { %v255_v54 = vpop.f32.mrf.mxu1 }
 0x1fc   :  { %331 = vst [vmem:[#allocation5 + $0x50] sm:$0xff] %v255_v54 }
 0x200   :  { %v288_v55 = vpop.f32.mrf.mxu2 }
 0x201   :  { %342 = vst [vmem:[#allocation5 + $0xa8] sm:$0xff] %v288_v55 }
 0x208   :  { %v291_v56 = vpop.f32.mrf.mxu2 }
 0x209   :  { %343 = vst [vmem:[#allocation5 + $0xb0] sm:$0xff] %v291_v56 }
 0x20a   :  { %365 = dma.vmem_to_hbm [thread:$0]  %s358_s17, 4096, %s360_s22, [#allocation4], %s478_s20, %s478_s20, %s479_s21  }
 0x20b   :  { %475 = dma.done.wait [#allocation4], 4096  }
 0x20c   :  { %476 = vsyncadd [#allocation4], 4294963200 }
 0x20d   :  { %370 = vsyncpa [#allocation3], 1 }
 0x20e   :  { %371 = vsyncpa [#allocation4], 1 }

</bundles_post_ra>
